<compile_context>
chip_gen: v7x
topology: tpu7x:2x2x1
jax: 0.10.0
libtpu: 0.0.40
codegen_flags: <defaults>
</compile_context>

<pallas_src>
import functools
import math

import jax
import jax.numpy as jnp
from jax.experimental import pallas as pl
from jax.experimental.pallas import tpu as pltpu


def _sinusoidal_kernel(x_ref, dtm_ref, o_ref, *, pack, use_mxu):
    # x_ref  : (tile_rows, K)  cols [0, pack) = packed indices, col pack = 1.0,
    #                          remaining cols = 0 (K rounded up to a multiple of 8)
    # dtm_ref: (K, W)          rows [0, pack) = lane-masked (pairwise repeated)
    #                          div_term, row pack = phase row [0, pi/2, ...],
    #                          remaining rows = 0
    # o_ref  : (tile_rows, W)  W = pack * d_eff, multiple of 128 (lane dense)
    x = x_ref[...]
    dtm = dtm_ref[...]
    if use_mxu:
        # The masked expansion + phase add is literally an (R,K)x(K,W) matmul:
        # run it on the idle MXU (vector-extended slot) so the VPU only does sin.
        # precision=HIGHEST -> 6-pass bf16, ~f32 accurate (validated in __main__).
        arg = jax.lax.dot_general(
            x, dtm,
            dimension_numbers=(((1,), (0,)), ((), ())),
            precision=jax.lax.Precision.HIGHEST,
            preferred_element_type=jnp.float32,
        )
    else:
        # Exact f32 VPU fallback: one broadcast-mul-add per packed index.
        arg = x[:, 0:1] * dtm[0:1, :] + dtm[pack:pack + 1, :]
        for p in range(1, pack):
            arg = arg + x[:, p:p + 1] * dtm[p:p + 1, :]
    # NOTE: a further v7x-only option is sharing sin/cos range reduction across
    # the paired lanes (same argument) and re-interleaving via the XLU.
    o_ref[...] = jnp.sin(arg).astype(o_ref.dtype)


def _choose_packing(d_model, *, target_lanes=512, max_lanes=4096):
    """Return (d_eff, pack): output rows hold `pack` indices x `d_eff` features."""
    g = math.gcd(d_model, 128)
    w0 = d_model * (128 // g)                 # lcm(d_model, 128): minimal aligned width
    if w0 <= max_lanes:
        mult = max(1, target_lanes // w0)     # widen toward ~512 lanes per row
        return d_model, (w0 // d_model) * mult
    # Pathological lcm: pad feature width to a multiple of 128, slice afterwards.
    d_eff = ((d_model + 127) // 128) * 128
    return d_eff, max(1, target_lanes // d_eff)


def sinusoidal_positional_embedding(emb_indices, d_model, *, tile_rows=None,
                                    out_dtype=jnp.float32, use_mxu=True):
    if d_model % 2 != 0:
        raise ValueError(f"Sinusoidal positional encoding with odd d_model: {d_model}")

    # ---- packing geometry ---------------------------------------------------
    d_eff, pack = _choose_packing(d_model)
    width = pack * d_eff                              # output lanes per packed row
    k_dim = ((pack + 1 + 7) // 8) * 8                 # indices + ones col, padded to 8

    # ---- constants (identical to the PyTorch module buffers) -----------------
    div_indices = jnp.arange(0, d_model, 2, dtype=jnp.float32)
    div_term = jnp.exp(div_indices * (-math.log(10000.0) / d_model))       # (d_model/2,)
    dt_row = jnp.repeat(div_term, 2)                                       # (d_model,)
    ph_row = jnp.tile(jnp.array([0.0, math.pi / 2.0], jnp.float32), d_model // 2)
    if d_eff > d_model:                                                    # padded features -> 0
        dt_row = jnp.pad(dt_row, (0, d_eff - d_model))
        ph_row = jnp.pad(ph_row, (0, d_eff - d_model))

    lane_group = jnp.arange(width, dtype=jnp.int32) // d_eff               # (W,)
    dtm = jnp.where(
        lane_group[None, :] == jnp.arange(pack, dtype=jnp.int32)[:, None],
        jnp.tile(dt_row, pack)[None, :], 0.0).astype(jnp.float32)          # (pack, W)
    dtm_aug = jnp.concatenate(
        [dtm,
         jnp.tile(ph_row, pack)[None, :],                                  # phase row
         jnp.zeros((k_dim - pack - 1, width), jnp.float32)], axis=0)       # (K, W)

    # ---- flatten / pad the indices -------------------------------------------
    input_shape = emb_indices.shape
    x = emb_indices.reshape(-1).astype(jnp.float32)
    n = x.shape[0]
    rows_total = -(-max(n, 1) // pack)

    # ---- generation-aware tile sizing ----------------------------------------
    try:
        vmem_cap = int(pltpu.get_tpu_info().vmem_capacity_bytes)
    except Exception:
        vmem_cap = 64 * 1024 * 1024                   # conservative (v7x-sized) fallback
    vmem_budget = min(vmem_cap // 2, 64 * 1024 * 1024)

    out_itemsize = jnp.dtype(out_dtype).itemsize
    row_align = max(8, 32 // out_itemsize)
    if tile_rows is None:
        # Footprint per step ~ 2 * (out_tile + lane-padded x_tile (~out/4) + dtm)
        # plus compiler scratch -> keep out_tile <= budget/5 (>= the ~4 MiB target).
        out_tile_bytes = max(512 * 1024, min(vmem_budget // 5, 8 * 1024 * 1024))
        tile_rows = out_tile_bytes // (width * out_itemsize)
    tile_rows = max(row_align, (tile_rows // row_align) * row_align)
    if rows_total >= 64:
        # Guarantee >= 2 grid steps when there is real work, so a 2-TensorCore
        # chip (v7x) can shard the "parallel" axis; no-op on v5e/v6e.
        half = ((-(-rows_total // 2)) + row_align - 1) // row_align * row_align
        tile_rows = min(tile_rows, max(row_align, half))
    tile_rows = min(tile_rows,
                    max(row_align, ((rows_total + row_align - 1) // row_align) * row_align))

    grid_n = pl.cdiv(rows_total, tile_rows)
    rows_pad = grid_n * tile_rows
    n_pad = rows_pad * pack

    # x_aug: packed indices + ones column (folds the phase add into the matmul)
    # + zero columns (exact, keeps the contraction dim a multiple of 8).
    x2 = jnp.pad(x, (0, n_pad - n)).reshape(rows_pad, pack)
    x_aug = jnp.concatenate(
        [x2,
         jnp.ones((rows_pad, 1), jnp.float32),
         jnp.zeros((rows_pad, k_dim - pack - 1), jnp.float32)], axis=1)    # (rows_pad, K)

    out = pl.pallas_call(
        functools.partial(_sinusoidal_kernel, pack=pack, use_mxu=use_mxu),
        out_shape=jax.ShapeDtypeStruct((rows_pad, width), out_dtype),
        grid=(grid_n,),
        in_specs=[
            pl.BlockSpec((tile_rows, k_dim), lambda i: (i, 0)),
            pl.BlockSpec((k_dim, width), lambda i: (0, 0)),   # constant block, fetched once
        ],
        out_specs=pl.BlockSpec((tile_rows, width), lambda i: (i, 0)),
        compiler_params=pltpu.CompilerParams(
            dimension_semantics=("parallel",),
            vmem_limit_bytes=int(vmem_budget),
        ),
    )(x_aug, dtm_aug)

    # (rows_pad, pack * d_eff) is row-major identical to (rows_pad * pack, d_eff).
    out = out.reshape(n_pad, d_eff)[:n, :d_model]
    return out.reshape(*input_shape, d_model)


def _reference(emb_indices, d_model):
    # Pure-JAX reference mirroring the PyTorch forward for validation.
    div_indices = jnp.arange(0, d_model, 2, dtype=jnp.float32)
    div_term = jnp.exp(div_indices * (-math.log(10000.0) / d_model))
    x = emb_indices.reshape(-1).astype(jnp.float32)
    omegas = x[:, None, None] * div_term[None, :, None]                    # (N, D/2, 1)
    emb = jnp.concatenate([jnp.sin(omegas), jnp.cos(omegas)], axis=2)      # (N, D/2, 2)
    return emb.reshape(*emb_indices.shape, d_model)


if __name__ == "__main__":
    key = jax.random.PRNGKey(0)

    # Main case: d_model=32 -> packed path (pack=16, W=512), MXU expansion.
    d_model = 32
    emb_indices = jax.random.uniform(key, (2, 4, 16), dtype=jnp.float32) * 100.0
    out = jax.block_until_ready(sinusoidal_positional_embedding(emb_indices, d_model))
    ref = _reference(emb_indices, d_model)
    assert out.shape == (2, 4, 16, d_model), out.shape
    assert out.dtype == jnp.float32
    # MXU (precision=HIGHEST) adds ~ulp-of-argument error for positions ~1e2.
    assert jnp.allclose(out, ref, atol=1e-4, rtol=1e-4), float(jnp.max(jnp.abs(out - ref)))

    # Exact all-VPU fallback path on the same data (tighter tolerance).
    out_v = jax.block_until_ready(
        sinusoidal_positional_embedding(emb_indices, d_model, use_mxu=False))
    assert jnp.allclose(out_v, ref, atol=1e-5, rtol=1e-5), float(jnp.max(jnp.abs(out_v - ref)))

    # d_model=128 (divides-128 path, pack=4) and d_model=96 (lcm path, W=384).
    for dm, shp, seed in ((128, (8,), 1), (96, (3, 5), 2)):
        idx = jax.random.uniform(jax.random.PRNGKey(seed), shp, dtype=jnp.float32) * 100.0
        o = jax.block_until_ready(sinusoidal_positional_embedding(idx, dm))
        r = _reference(idx, dm)
        assert o.shape == (*shp, dm), (o.shape, shp, dm)
        assert jnp.allclose(o, r, atol=1e-4, rtol=1e-4), float(jnp.max(jnp.abs(o - r)))

    print("KERNEL_OK")
</pallas_src>

<mosaic_0001>
module attributes {stable_mosaic.version = 11 : i64} {
  func.func @_sinusoidal_kernel(%arg0: i32, %arg1: memref<8x24xf32, #tpu.memory_space<vmem>>, %arg2: memref<24x512xf32, #tpu.memory_space<vmem>>, %arg3: memref<8x512xf32, #tpu.memory_space<vmem>>) attributes {dimension_semantics = [#tpu.dimension_semantics<parallel>], iteration_bounds = array<i64: 1>, scalar_prefetch = 0 : i64, scratch_operands = 0 : i64, tpu.core_type = #tpu.core_type<tc>, window_params = [{transform_indices = @transform_0, window_bounds = array<i64: 8, 24>}, {pipeline_mode = #tpu.pipeline_mode<synchronous>, transform_indices = @transform_1, window_bounds = array<i64: 24, 512>}, {transform_indices = @transform_2, window_bounds = array<i64: 8, 512>}]} {
    %c0 = arith.constant 0 : index
    %c0_0 = arith.constant 0 : index
    %0 = vector.load %arg1[%c0, %c0_0] : memref<8x24xf32, #tpu.memory_space<vmem>>, vector<8x24xf32>
    %c0_1 = arith.constant 0 : index
    %c0_2 = arith.constant 0 : index
    %1 = vector.load %arg2[%c0_1, %c0_2] : memref<24x512xf32, #tpu.memory_space<vmem>>, vector<24x512xf32>
    %cst = arith.constant dense<0.000000e+00> : vector<8x512xf32>
    %2 = tpu.matmul %0, %1, %cst {dimension_numbers = #tpu.dot_dimension_numbers<[1], [0], [0], [1], [0, 0, 1, 1], [], []>, precision = #tpu.contract_precision<fp32>} : vector<8x24xf32>, vector<24x512xf32>, vector<8x512xf32> -> vector<8x512xf32>
    %3 = math.sin %2 : vector<8x512xf32>
    %c0_3 = arith.constant 0 : index
    %c0_4 = arith.constant 0 : index
    %4 = vector.load %arg3[%c0_3, %c0_4] : memref<8x512xf32, #tpu.memory_space<vmem>>, vector<8x512xf32>
    tpu.vector_store %arg3[%c0_3, %c0_4], %3 {strides = array<i32>} : memref<8x512xf32, #tpu.memory_space<vmem>>, vector<8x512xf32>,
    return
  }
  func.func @transform_0(%arg0: i32) -> (i32, i32) {
    %c0_i32 = arith.constant 0 : i32
    %c0_i32_0 = arith.constant 0 : i32
    return %arg0, %c0_i32 : i32, i32
  }
  func.func @transform_1(%arg0: i32) -> (i32, i32) {
    %c0_i32 = arith.constant 0 : i32
    %c0_i32_0 = arith.constant 0 : i32
    %c0_i32_1 = arith.constant 0 : i32
    return %c0_i32, %c0_i32_0 : i32, i32
  }
  func.func @transform_2(%arg0: i32) -> (i32, i32) {
    %c0_i32 = arith.constant 0 : i32
    %c0_i32_0 = arith.constant 0 : i32
    return %arg0, %c0_i32 : i32, i32
  }
}

</mosaic_0001>

<bundles_post_ra>
// kernel: tpu_custom_call.1
= control target key start
LH: loop header
LB: loop body
LE: loop exit
PB: predicated region body
PF: predicated region fallthrough
CT: control target
= control target key end

     0   :  { %7 = vsyncpa [#allocation3], 0  ;;  %s2232_s0 = inlined_call_operand.hbm [shape: f32[8,24], index: 0, kind: input, shape index: {}]   ;;  %s2233_s1 = inlined_call_operand.hbm [shape: f32[24,512], index: 1, kind: input, shape index: {}]   ;;  %s2234_s2 = inlined_call_operand.hbm [shape: f32[8,512], index: 2, kind: output, shape index: {}]  }
   0x1   :  { %8 = vsyncpa [#allocation6], 0 }
   0x2   :  { %9 = vsyncpa [#allocation4], 0  ;;  %s1725_s9 = smov [#allocation2]   ;;  %s1726_s11 = smov [#allocation5]  }
   0x3   :  { %s16_s10 = sshll.u32 %s1725_s9, 4  ;;  %s25_s12 = sshll.u32 %s1726_s11, 4  ;;  %s17_s10 = int_to_ptr.vmem [resolvable:$true] %s16_s10  ;;  %s1752_s12 = int_to_ptr.vmem [resolvable:$true] %s25_s12 }
   0x4   :  { %s1653_s15 = scalar_lea.hbm %s2232_s0, 128 }
   0x5   :  { %p1654_p0 = scmp.ne.s32.totalorder %s2232_s0, %s1653_s15  ;;  %p1657_p1 = scmp.lt.u32.totalorder %s1653_s15, %s2232_s0 }
   0x7   :  { %p1659_p2 = pnand %p1657_p1, %p1654_p0 }
   0x9   :  { %1662 = shalt.err (!%p1659_p2)
}
   0xa   :  { %s1663_s20 = scalar_lea.vmem %s17_s10, 128  ;;  %p1668_p4 = scmp.lt.s32.totalorder %s17_s10, %s17_s10 }
   0xb   :  { %p1664_p3 = scmp.ne.s32.totalorder %s17_s10, %s1663_s20  ;;  %p1669_p5 = scmp.lt.s32.totalorder %s1663_s20, %s1663_s20 }
   0xd   :  { %p1670_p6 = por %p1669_p5, %p1668_p4 }
   0xf   :  { %p1671_p7 = pnand %p1670_p6, %p1664_p3 }
  0x11   :  { %1674 = shalt.err (!%p1671_p7)
}
  0x12   :  { %19 = dma.hbm_to_vmem [thread:$0]  %s2232_s0, 128, %s17_s10, [#allocation3]  }
  0x13   :  { %s1675_s25 = scalar_lea.hbm %s2233_s1, 1536 }
  0x14   :  { %p1676_p8 = scmp.ne.s32.totalorder %s2233_s1, %s1675_s25  ;;  %p1679_p9 = scmp.lt.u32.totalorder %s1675_s25, %s2233_s1 }
  0x16   :  { %p1681_p10 = pnand %p1679_p9, %p1676_p8 }
  0x18   :  { %1684 = shalt.err (!%p1681_p10)
}
  0x19   :  { %s1685_s30 = scalar_lea.vmem %s1752_s12, 1536  ;;  %p1690_p12 = scmp.lt.s32.totalorder %s1752_s12, %s1752_s12 }
  0x1a   :  { %p1686_p11 = scmp.ne.s32.totalorder %s1752_s12, %s1685_s30  ;;  %p1691_p13 = scmp.lt.s32.totalorder %s1685_s30, %s1685_s30 }
  0x1c   :  { %p1692_p0 = por %p1691_p13, %p1690_p12 }
  0x1e   :  { %p1693_p1 = pnand %p1692_p0, %p1686_p11 }
  0x20   :  { %1696 = shalt.err (!%p1693_p1)
}
  0x21   :  { %s1727_s0 = smov 512   ;;  %s1728_s3 = smov 32  }
  0x22   :  { %31 = dma.hbm_to_vmem [thread:$0]  %s2233_s1, 1536, %s1752_s12, [#allocation6], %s1727_s0, %s1727_s0, %s1728_s3  }
  0x23   :  { %1719 = dma.done.wait [#allocation3], 128  }
  0x24   :  { %1720 = vsyncadd [#allocation3], 4294967168 }
  0x25   :  { %1721 = dma.done.wait [#allocation6], 1536  }
  0x26   :  { %1722 = vsyncadd [#allocation6], 4294965760  ;;  %v1729_v0 = vmov 0.0   ;;  %v40_v1 = vld [vmem:[#allocation5 + $0x8] sm:$0xff]  ;;  %v42_v3 = vld [vmem:[#allocation5 + $0x18] sm:$0xff]  ;;  %vm51_vm0 = vcmask 195584  }
  0x27   :  { %125 = vmatprep.mubr.f32.mxu0 %v1729_v0  ;;  %642 = vmatprep.mubr.f32.mxu1 %v1729_v0  ;;  %v44_v2 = vld [vmem:[#allocation5 + $0x28] sm:$0xff]  ;;  %v55_v4 = vand.u32 4294901760, %v40_v1  ;;  %v46_v6 = vld [vmem:[#allocation5 + $0x38] sm:$0xff]  ;;  %v572_v7 = vand.u32 4294901760, %v42_v3  ;;  %v39_v8 = vld [vmem:[#allocation5] sm:$0xff]  ;;  %s1736_s1 = smov [#allocation7]  }
  0x28   :  { %v59_v5 = vand.u32 4294901760, %v44_v2  ;;  %v43_v9 = vld [vmem:[#allocation5 + $0x20] sm:$0xff]  ;;  %v576_v10 = vand.u32 4294901760, %v46_v6  ;;  %v57_v11 = vand.u32 4294901760, %v39_v8  ;;  %v41_v13 = vld [vmem:[#allocation5 + $0x10] sm:$0xff]  ;;  %v1785_v15 = vld [vmem:[#allocation5 + $0x48] sm:$0xff] }
  0x29   :  { %v61_v12 = vand.u32 4294901760, %v43_v9  ;;  %v45_v14 = vld [vmem:[#allocation5 + $0x30] sm:$0xff]  ;;  %v1789_v17 = vsub.f32 %v40_v1, %v55_v4  ;;  %v1793_v19 = vsub.f32 %v42_v3, %v572_v7  ;;  %v50_v20 = vld [vmem:[#allocation5 + $0x58] sm:$0xff]  ;;  %v47_v21 = vld [vmem:[#allocation5 + $0x40] sm:$0xff]  ;;  %v574_v29 = vand.u32 4294901760, %v41_v13  ;;  %s1515_s6 = sshll.u32 %s1736_s1, 4  ;;  %s1516_s6 = int_to_ptr.vmem [resolvable:$true] %s1515_s6 }
  0x2a   :  { %v1787_v16 = vpack.c.bf16 %v59_v5, %v55_v4  ;;  %v1791_v18 = vsub.f32 %v44_v2, %v59_v5  ;;  %v49_v22 = vld [vmem:[#allocation5 + $0x50] sm:$0xff]  ;;  %v1795_v23 = vpack.c.bf16 %v576_v10, %v572_v7  ;;  %v1797_v24 = vsub.f32 %v46_v6, %v576_v10  ;;  %v38_v27 = vld [vmem:[#allocation2] sm:$0xff]  ;;  %s1697_s7 = scalar_lea.vmem %s1516_s6, 512  ;;  %p1702_p3 = scmp.lt.s32.totalorder %s1516_s6, %s1516_s6 }
  0x2b   :  { %v1799_v25 = vpack.c.bf16 %v61_v12, %v57_v11  ;;  %v1801_v26 = vsub.f32 %v39_v8, %v57_v11  ;;  %v1804_v28 = vsub.f32 %v43_v9, %v61_v12  ;;  %v578_v30 = vand.u32 4294901760, %v45_v14  ;;  %p1698_p2 = scmp.ne.s32.totalorder %s1516_s6, %s1697_s7  ;;  %p1703_p4 = scmp.lt.s32.totalorder %s1697_s7, %s1697_s7 }
  0x2c   :  { %1542 = vmatprep.subr.bf16.mxu0 %v1787_v16  ;;  %v1807_v31 = vand.u32 4294901760, %v1785_v15  ;;  %1566 = vmatprep.subr.bf16.mxu1 %v1795_v23  ;;  %v1811_v32 = vand.u32 4294901760, %v50_v20  ;;  %v1813_v33 = vand.u32 4294901760, %v47_v21  ;;  %v1815_v34 = vand.u32 4294901760, %v49_v22 }
  0x2d   :  { %1544 = vmatpush1.bf16.msra.mxu0 %v1799_v25  ;;  %v53_v35 = vsel %vm51_vm0, %v38_v27, 0  ;;  %v1818_v36 = vpack.c.bf16 %v578_v30, %v574_v29  ;;  %v1820_v37 = vsub.f32 %v41_v13, %v574_v29  ;;  %v1822_v38 = vsub.f32 %v45_v14, %v578_v30  ;;  %p1704_p5 = por %p1703_p4, %p1702_p3 }
  0x2e   :  { %64 = vmatprep.subr.mxu0 %v1807_v31  ;;  %v1825_v39 = vand.u32 4294901760, %v53_v35  ;;  %v1828_v40 = vsub.f32 %v47_v21, %v1813_v33  ;;  %v1831_v41 = vsub.f32 %v49_v22, %v1815_v34  ;;  %v139_v42 = vand.u32 4294901760, %v1789_v17 }
  0x2f   :  { %v151_v43 = vand.u32 4294901760, %v1791_v18  ;;  %1568 = vmatpush1.bf16.msra.mxu1 %v1818_v36  ;;  %v656_v45 = vand.u32 4294901760, %v1793_v19  ;;  %v668_v46 = vand.u32 4294901760, %v1797_v24  ;;  %v145_v47 = vand.u32 4294901760, %v1801_v26  ;;  %p1705_p6 = pnand %p1704_p5, %p1698_p2 }
  0x30   :  { %v1837_v44 = vsub.f32 %v53_v35, %v1825_v39  ;;  %581 = vmatprep.subr.mxu1 %v1811_v32  ;;  %v140_v48 = vsub.f32 %v1789_v17, %v139_v42  ;;  %v157_v50 = vand.u32 4294901760, %v1804_v28  ;;  %v662_v51 = vand.u32 4294901760, %v1820_v37 }
  0x31   :  { %66 = vmatpush1.msra.mxu0 %v1813_v33  ;;  %v152_v49 = vsub.f32 %v1791_v18, %v151_v43  ;;  %v657_v53 = vsub.f32 %v1793_v19, %v656_v45  ;;  %v669_v54 = vsub.f32 %v1797_v24, %v668_v46  ;;  %v146_v55 = vsub.f32 %v1801_v26, %v145_v47 }
  0x32   :  { %v1853_v52 = vand.u32 4294901760, %v1837_v44  ;;  %v141_v56 = vand.u32 4294901760, %v140_v48  ;;  %v158_v58 = vsub.f32 %v1804_v28, %v157_v50  ;;  %v663_v59 = vsub.f32 %v1820_v37, %v662_v51 }
  0x33   :  { %v153_v57 = vand.u32 4294901760, %v152_v49  ;;  %583 = vmatpush1.msra.mxu1 %v1815_v34  ;;  %v658_v61 = vand.u32 4294901760, %v657_v53  ;;  %v670_v62 = vand.u32 4294901760, %v669_v54  ;;  %v147_v63 = vand.u32 4294901760, %v146_v55 }
  0x34   :  { %v129_v60 = vsub.f32 %v1837_v44, %v1853_v52  ;;  %v159_v2 = vand.u32 4294901760, %v158_v58  ;;  %v664_v3 = vand.u32 4294901760, %v663_v59  ;;  %v674_v4 = vand.u32 4294901760, %v1822_v38 }
  0x35   :  { %v1545_v1 = vpack.c.bf16 %v153_v57, %v141_v56  ;;  %v1569_v6 = vpack.c.bf16 %v670_v62, %v658_v61  ;;  %v1876_v7 = vsub.f32 %v1785_v15, %v1807_v31  ;;  %v1879_v8 = vsub.f32 %v50_v20, %v1811_v32 }
  0x36   :  { %v130_v5 = vand.u32 4294901760, %v129_v60  ;;  %v1547_v9 = vpack.c.bf16 %v159_v2, %v147_v63  ;;  %v675_v10 = vsub.f32 %v1822_v38, %v674_v4  ;;  %v169_v11 = vand.u32 4294901760, %v1828_v40 }
  0x37   :  { %1546 = vmatprep.subr.bf16.mxu0 %v1545_v1  ;;  %v686_v12 = vand.u32 4294901760, %v1831_v41  ;;  %v163_v13 = vand.u32 4294901760, %v1876_v7  ;;  %v680_v14 = vand.u32 4294901760, %v1879_v8  ;;  %1570 = vmatprep.subr.bf16.mxu1 %v1569_v6  ;;  %v1549_v49 = vpack.c.bf16 %v1791_v18, %v1789_v17 }
  0x38   :  { %131 = vmatmul.mubr.f32.vlgmr.msra.gmra.mrb[0].mxu0 %v130_v5  ;;  %648 = vmatmul.mubr.f32.vlgmr.msra.gmra.mrb[0].mxu1 %v130_v5  ;;  %v676_v15 = vand.u32 4294901760, %v675_v10  ;;  %v170_v20 = vsub.f32 %v1828_v40, %v169_v11  ;;  %v1551_v54 = vpack.c.bf16 %v1804_v28, %v1801_v26  ;;  %v1573_v55 = vpack.c.bf16 %v1797_v24, %v1793_v19 }
  0x39   :  { %1548 = vmatpush1.bf16.msra.mxu0 %v1547_v9  ;;  %v687_v21 = vsub.f32 %v1831_v41, %v686_v12  ;;  %v164_v22 = vsub.f32 %v1876_v7, %v163_v13  ;;  %v681_v27 = vsub.f32 %v1879_v8, %v680_v14  ;;  %231 = vmatprep.mubr.f32.mxu0 %v1729_v0  ;;  %v1730_v1 = vmov 683565275  }
  0x3a   :  { %748 = vmatprep.mubr.f32.mxu1 %v1729_v0  ;;  %v1571_v29 = vpack.c.bf16 %v676_v15, %v664_v3  ;;  %v171_v30 = vand.u32 4294901760, %v170_v20  ;;  %v1575_v56 = vpack.c.bf16 %v1822_v38, %v1820_v37  ;;  %v1557_v57 = vpack.c.bf16 %v151_v43, %v139_v42 }
  0x3b   :  { %v165_v35 = vand.u32 4294901760, %v164_v22  ;;  %v682_v48 = vand.u32 4294901760, %v681_v27  ;;  %v688_v53 = vand.u32 4294901760, %v687_v21  ;;  %v1581_v58 = vpack.c.bf16 %v668_v46, %v656_v45 }
  0x3c   :  { %1572 = vmatpush1.bf16.msra.mxu1 %v1571_v29  ;;  %v1559_v17 = vpack.c.bf16 %v157_v50, %v145_v47  ;;  %v1583_v18 = vpack.c.bf16 %v674_v4, %v662_v51  ;;  %v1731_v3 = vmov 2475754826   ;;  %v1732_v5 = vmov 2131351028  }
  0x3d   :  { %166 = vmatprep.subr.mxu0 %v165_v35  ;;  %683 = vmatprep.subr.mxu1 %v682_v48  ;;  %v1734_v9 = vmov 920167782   ;;  %v1735_v20 = vmov 1326507024  }
  0x3e   :  { %172 = vmatpush1.msra.mxu0 %v171_v30 }
  0x3f   :  { %1550 = vmatprep.subr.bf16.mxu0 %v1549_v49 }
  0x40   :  { %233 = vmatmul.mubr.f32.vlgmr.msra.gmra.mrb[0].mxu0 %v1825_v39  ;;  %689 = vmatpush1.msra.mxu1 %v688_v53 }
  0x41   :  { %1552 = vmatpush1.bf16.msra.mxu0 %v1551_v54  ;;  %750 = vmatmul.mubr.f32.vlgmr.msra.gmra.mrb[0].mxu1 %v1825_v39 }
  0x42   :  { %1574 = vmatprep.subr.bf16.mxu1 %v1573_v55  ;;  %253 = vmatprep.subr.mxu0 %v1876_v7  ;;  %v1733_v7 = vmov 2102212464  }
  0x43   :  { %1576 = vmatpush1.bf16.msra.mxu1 %v1575_v56  ;;  %315 = vmatprep.mubr.f32.mxu0 %v1729_v0 }
  0x44   :  { %770 = vmatprep.subr.mxu1 %v1879_v8  ;;  %832 = vmatprep.mubr.f32.mxu1 %v1729_v0 }
  0x45   :  { %256 = vmatpush1.msra.mxu0 %v1828_v40 }
  0x46   :  { %1554 = vmatprep.subr.bf16.mxu0 %v1787_v16 }
  0x47   :  { %773 = vmatpush1.msra.mxu1 %v1831_v41 }
  0x48   :  { %318 = vmatmul.mubr.f32.vlgmr.msra.gmra.mrb[0].mxu0 %v1837_v44  ;;  %1578 = vmatprep.subr.bf16.mxu1 %v1795_v23 }
  0x49   :  { %1556 = vmatpush1.bf16.msra.mxu0 %v1799_v25  ;;  %394 = vmatprep.mubr.f32.mxu0 %v1729_v0 }
  0x4a   :  { %835 = vmatmul.mubr.f32.vlgmr.msra.gmra.mrb[0].mxu1 %v1837_v44  ;;  %333 = vmatprep.subr.mxu0 %v1807_v31 }
  0x4b   :  { %1580 = vmatpush1.bf16.msra.mxu1 %v1818_v36  ;;  %911 = vmatprep.mubr.f32.mxu1 %v1729_v0 }
  0x4c   :  { %850 = vmatprep.subr.mxu1 %v1811_v32 }
  0x4d   :  { %335 = vmatpush1.msra.mxu0 %v1813_v33 }
  0x4e   :  { %1558 = vmatprep.subr.bf16.mxu0 %v1557_v57 }
  0x4f   :  { %852 = vmatpush1.msra.mxu1 %v1815_v34 }
  0x50   :  { %398 = vmatmul.mubr.f32.vlgmr.msra.gmra.mrb[0].mxu0 %v1853_v52  ;;  %1582 = vmatprep.subr.bf16.mxu1 %v1581_v58 }
  0x51   :  { %1560 = vmatpush1.bf16.msra.mxu0 %v1559_v17  ;;  %486 = vmatprep.mubr.f32.mxu0 %v1729_v0 }
  0x52   :  { %915 = vmatmul.mubr.f32.vlgmr.msra.gmra.mrb[0].mxu1 %v1853_v52  ;;  %423 = vmatprep.subr.mxu0 %v163_v13 }
  0x53   :  { %1584 = vmatpush1.bf16.msra.mxu1 %v1583_v18  ;;  %1003 = vmatprep.mubr.f32.mxu1 %v1729_v0 }
  0x54   :  { %940 = vmatprep.subr.mxu1 %v680_v14 }
  0x55   :  { %427 = vmatpush1.msra.mxu0 %v169_v11 }
  0x56   :  { %1562 = vmatprep.subr.bf16.mxu0 %v1787_v16 }
  0x57   :  { %944 = vmatpush1.msra.mxu1 %v686_v12 }
  0x58   :  { %488 = vmatmul.mubr.f32.vlgmr.msra.gmra.mrb[0].mxu0 %v1825_v39  ;;  %1586 = vmatprep.subr.bf16.mxu1 %v1795_v23 }
  0x59   :  { %1564 = vmatpush1.bf16.msra.mxu0 %v1799_v25  ;;  %564 = vmatprep.mubr.f32.mxu0 %v1729_v0 }
  0x5a   :  { %1005 = vmatmul.mubr.f32.vlgmr.msra.gmra.mrb[0].mxu1 %v1825_v39  ;;  %503 = vmatprep.subr.mxu0 %v1807_v31 }
  0x5b   :  { %1588 = vmatpush1.bf16.msra.mxu1 %v1818_v36  ;;  %1081 = vmatprep.mubr.f32.mxu1 %v1729_v0 }
  0x5c   :  { %1020 = vmatprep.subr.mxu1 %v1811_v32 }
  0x5d   :  { %505 = vmatpush1.msra.mxu0 %v1813_v33 }
  0x5f   :  { %1022 = vmatpush1.msra.mxu1 %v1815_v34 }
  0x60   :  { %566 = vmatmul.mubr.f32.vlgmr.msra.gmra.mrb[0].mxu0 %v1825_v39 }
  0x62   :  { %1083 = vmatmul.mubr.f32.vlgmr.msra.gmra.mrb[0].mxu1 %v1825_v39 }
 0x133   :  { %v1964_v16 = vpop.f32.mrb[0].mxu0 }
 0x134   :  { %v1089_v19 = vand.u32 2147483647, %v1964_v16  ;;  %v1092_v23 = vand.u32 2139095040, %v1964_v16  ;;  %v1968_v24 = vpop.f32.mrb[1].mxu0  ;;  %vm1091_vm13 = vcmp.lt.s32.totalorder %v1964_v16, 0 }
 0x135   :  { %v1970_v25 = vpop.f32.mrb[0].mxu1  ;;  %v1196_v0 = vand.u32 2139095040, %v1968_v24  ;;  %v1193_v28 = vand.u32 2147483647, %v1968_v24 }
 0x136   :  { %v1093_v26 = vshrl.u32 %v1092_v23, 23  ;;  %v1096_v31 = vand.u32 8388607, %v1089_v19  ;;  %v1297_v32 = vand.u32 2147483647, %v1970_v25  ;;  %v1300_v33 = vand.u32 2139095040, %v1970_v25 }
 0x137   :  { %v1978_v34 = vpop.f32.mrb[1].mxu1  ;;  %v1197_v37 = vshrl.u32 %v1196_v0, 23  ;;  %v1984_v45 = vand.u32 8388607, %v1193_v28  ;;  %vm2067_vm0 = vcmp.le.f32.partialorder %v1089_v19, 0.7853982 }
 0x138   :  { %v1525_v36 = vadd.s32 4294967169, %v1093_v26  ;;  %v1301_v38 = vshrl.u32 %v1300_v33, 23  ;;  %v1304_v39 = vand.u32 8388607, %v1297_v32  ;;  %v1097_v42 = vor.u32 8388608, %v1096_v31 }
 0x139   :  { %v1529_v41 = vadd.s32 4294967169, %v1197_v37  ;;  %v1201_v61 = vor.u32 8388608, %v1984_v45  ;;  %v1404_v62 = vand.u32 2139095040, %v1978_v34 }
 0x13a   :  { %v1099_v40 = vadd.s32 1, %v1525_v36  ;;  %v1533_v43 = vadd.s32 4294967169, %v1301_v38  ;;  %v1305_v44 = vor.u32 8388608, %v1304_v39  ;;  %v1986_v59 = vshll.u32 %v1097_v42, 8 }
 0x13b   :  { %v1203_v46 = vadd.s32 1, %v1529_v41 }
 0x13c   :  { %vm1100_vm1 = vcmp.gt.s32.totalorder %v1099_v40, 0  ;;  %v1307_v50 = vadd.s32 1, %v1533_v43  ;;  %v1988_v60 = vshll.u32 %v1305_v44, 8 }
 0x13d   :  { %v1101_v47 = vsel %vm1100_vm1, %v1099_v40, 0  ;;  %vm1204_vm3 = vcmp.gt.s32.totalorder %v1203_v46, 0 }
 0x13e   :  { %v1102_v51 = vshrl.u32 %v1101_v47, 5  ;;  %v1103_v52 = vand.u32 31, %v1101_v47  ;;  %vm1308_vm2 = vcmp.gt.s32.totalorder %v1307_v50, 0  ;;  %v1205_v26 = vsel %vm1204_vm3, %v1203_v46, 0 }
 0x13f   :  { %v1309_v30 = vsel %vm1308_vm2, %v1307_v50, 0 }
 0x140   :  { %v1104_v63 = vsub.s32 32, %v1103_v52  ;;  %v1106_v2 = vshll.u32 %v1730_v1, %v1103_v52  ;;  %v1109_v4 = vshll.u32 %v1731_v3, %v1103_v52  ;;  %v1112_v6 = vshll.u32 %v1732_v5, %v1103_v52 }
 0x141   :  { %v1115_v8 = vshll.u32 %v1733_v7, %v1103_v52  ;;  %v1118_v10 = vshll.u32 %v1734_v9, %v1103_v52  ;;  %vm1121_vm4 = vcmp.lt.s32.totalorder %v1102_v51, 1  ;;  %vm1123_vm5 = vcmp.lt.s32.totalorder %v1102_v51, 3 }
 0x142   :  { %v1107_v11 = vshrl.u32 %v1731_v3, %v1104_v63  ;;  %v1110_v12 = vshrl.u32 %v1732_v5, %v1104_v63  ;;  %v1113_v13 = vshrl.u32 %v1733_v7, %v1104_v63  ;;  %v1105_v14 = vshrl.u32 %v1730_v1, %v1104_v63 }
 0x143   :  { %v1116_v15 = vshrl.u32 %v1734_v9, %v1104_v63  ;;  %v1119_v21 = vshrl.u32 %v1735_v20, %v1104_v63  ;;  %vm1124_vm6 = vcmp.lt.s32.totalorder %v1102_v51, 4  ;;  %v1311_v49 = vand.u32 31, %v1309_v30 }
 0x144   :  { %v1108_v22 = vor.u32 %v1107_v11, %v1106_v2  ;;  %v1111_v27 = vor.u32 %v1110_v12, %v1109_v4  ;;  %v1114_v29 = vor.u32 %v1113_v13, %v1112_v6  ;;  %vm1122_vm7 = vcmp.lt.s32.totalorder %v1102_v51, 2 }
 0x145   :  { %v1117_v35 = vor.u32 %v1116_v15, %v1115_v8  ;;  %v1120_v48 = vor.u32 %v1119_v21, %v1118_v10  ;;  %v1312_v18 = vsub.s32 32, %v1311_v49  ;;  %v1310_v37 = vshrl.u32 %v1309_v30, 5 }
 0x146   :  { %v1125_v53 = vsel %vm1121_vm4, %v1105_v14, %v1108_v22  ;;  %v1126_v54 = vsel %vm1124_vm6, %v1114_v29, 2102212464  ;;  %v1129_v55 = vsel %vm1121_vm4, %v1108_v22, %v1111_v27  ;;  %v1133_v56 = vsel %vm1121_vm4, %v1111_v27, %v1114_v29 }
 0x147   :  { %v1127_v57 = vsel %vm1123_vm5, %v1111_v27, %v1126_v54  ;;  %v1130_v58 = vsel %vm1124_vm6, %v1117_v35, 920167782  ;;  %v1134_v17 = vsel %vm1124_vm6, %v1120_v48, 1326507024  ;;  %v1314_v42 = vshll.u32 %v1730_v1, %v1311_v49 }
 0x148   :  { %v1131_v23 = vsel %vm1123_vm5, %v1114_v29, %v1130_v58  ;;  %v1135_v0 = vsel %vm1123_vm5, %v1117_v35, %v1134_v17  ;;  %v1128_v31 = vsel %vm1122_vm7, %v1125_v53, %v1127_v57  ;;  %v1315_v43 = vshrl.u32 %v1731_v3, %v1312_v18 }
 0x149   :  { %v1132_v33 = vsel %vm1122_vm7, %v1129_v55, %v1131_v23  ;;  %v1136_v36 = vsel %vm1122_vm7, %v1133_v56, %v1135_v0  ;;  %v1317_v44 = vshll.u32 %v1731_v3, %v1311_v49  ;;  %v1318_v46 = vshrl.u32 %v1732_v5, %v1312_v18 }
 0x14a   :  { %v2012_v38 = vmul.u32.u64.low %v1986_v59, %v1136_v36  ;;  %v2013_v39 = vmul.u32.u64.high %v1986_v59, %v1136_v36, %v2012_v38  ;;  %v2016_v40 = vmul.u32.u64.low %v1986_v59, %v1132_v33  ;;  %v2017_v41 = vmul.u32.u64.high %v1986_v59, %v1132_v33, %v2016_v40 }
 0x14b   :  { %v1320_v47 = vshll.u32 %v1732_v5, %v1311_v49  ;;  %v1321_v50 = vshrl.u32 %v1733_v7, %v1312_v18  ;;  %v1323_v51 = vshll.u32 %v1733_v7, %v1311_v49  ;;  %v1324_v52 = vshrl.u32 %v1734_v9, %v1312_v18 }
 0x14c   :  { %v1316_v63 = vor.u32 %v1315_v43, %v1314_v42  ;;  %v1319_v2 = vor.u32 %v1318_v46, %v1317_v44  ;;  %v1326_v4 = vshll.u32 %v1734_v9, %v1311_v49  ;;  %v1327_v6 = vshrl.u32 %v1735_v20, %v1312_v18 }
 0x14d   :  { %v1144_v8 = vmul.u32 %v1986_v59, %v1128_v31  ;;  %vm1146_vm8 = vc.u32 %v2013_v39, %v2016_v40  ;;  %v1147_v10 = vadd.s32 1, %v2017_v41  ;;  %v1322_v11 = vor.u32 %v1321_v50, %v1320_v47 }
 0x14e   :  { %v1313_v12 = vshrl.u32 %v1730_v1, %v1312_v18  ;;  %v1325_v13 = vor.u32 %v1324_v52, %v1323_v51  ;;  %v1328_v14 = vor.u32 %v1327_v6, %v1326_v4  ;;  %vm1329_vm9 = vcmp.lt.s32.totalorder %v1310_v37, 1 }
 0x14f   :  { %v1148_v15 = vsel %vm1146_vm8, %v1147_v10, %v2017_v41  ;;  %vm1331_vm10 = vcmp.lt.s32.totalorder %v1310_v37, 3  ;;  %vm1332_vm11 = vcmp.lt.s32.totalorder %v1310_v37, 4  ;;  %v1337_v21 = vsel %vm1329_vm9, %v1316_v63, %v1319_v2 }
 0x150   :  { %v1149_v22 = vadd.s32 %v1148_v15, %v1144_v8  ;;  %v1334_v27 = vsel %vm1332_vm11, %v1322_v11, 2102212464  ;;  %v1338_v29 = vsel %vm1332_vm11, %v1325_v13, 920167782  ;;  %v1341_v30 = vsel %vm1329_vm9, %v1319_v2, %v1322_v11 }
 0x151   :  { %vm1330_vm12 = vcmp.lt.s32.totalorder %v1310_v37, 2  ;;  %v1333_v59 = vsel %vm1329_vm9, %v1313_v12, %v1316_v63  ;;  %v1339_v35 = vsel %vm1331_vm10, %v1322_v11, %v1338_v29  ;;  %v1342_v48 = vsel %vm1332_vm11, %v1328_v14, 1326507024 }
 0x152   :  { %v1150_v49 = vadd.s32 536870912, %v1149_v22  ;;  %v1335_v53 = vsel %vm1331_vm10, %v1319_v2, %v1334_v27  ;;  %v1340_v54 = vsel %vm1330_vm12, %v1337_v21, %v1339_v35  ;;  %v1343_v55 = vsel %vm1331_vm10, %v1325_v13, %v1342_v48 }
 0x153   :  { %v1344_v56 = vsel %vm1330_vm12, %v1341_v30, %v1343_v55  ;;  %v2035_v57 = vmul.u32.u64.low %v1988_v60, %v1340_v54  ;;  %v2036_v58 = vmul.u32.u64.high %v1988_v60, %v1340_v54, %v2035_v57  ;;  %v2039_v17 = vshrl.u32 %v1205_v26, 5 }
 0x154   :  { %v1151_v18 = vshrl.u32 %v1150_v49, 30  ;;  %v2042_v23 = vmul.u32.u64.low %v1988_v60, %v1344_v56  ;;  %v2043_v0 = vmul.u32.u64.high %v1988_v60, %v1344_v56, %v2042_v23  ;;  %v1207_v31 = vand.u32 31, %v1205_v26 }
 0x155   :  { %v1336_v33 = vsel %vm1330_vm12, %v1333_v59, %v1335_v53  ;;  %v1401_v38 = vand.u32 2147483647, %v1978_v34  ;;  %v1145_v41 = vadd.s32 %v2016_v40, %v2013_v39  ;;  %v1355_v42 = vadd.s32 1, %v2036_v58 }
 0x156   :  { %v1152_v36 = vshll.u32 %v1151_v18, 30  ;;  %v1208_v37 = vsub.s32 32, %v1207_v31  ;;  %v2051_v43 = vshll.u32 %v1201_v61, 8  ;;  %v1405_v44 = vshrl.u32 %v1404_v62, 23 }
 0x157   :  { %v1352_v26 = vmul.u32 %v1988_v60, %v1336_v33  ;;  %vm1354_vm14 = vc.u32 %v2043_v0, %v2035_v57  ;;  %vm1225_vm15 = vcmp.lt.s32.totalorder %v2039_v17, 1  ;;  %v1210_v40 = vshll.u32 %v1730_v1, %v1207_v31 }
 0x158   :  { %v2055_v46 = vsub.s32 %v1149_v22, %v1152_v36  ;;  %v1356_v39 = vsel %vm1354_vm14, %v1355_v42, %v2036_v58  ;;  %v1211_v45 = vshrl.u32 %v1731_v3, %v1208_v37  ;;  %v1213_v61 = vshll.u32 %v1731_v3, %v1207_v31 }
 0x159   :  { %v1357_v47 = vadd.s32 %v1356_v39, %v1352_v26  ;;  %v1214_v50 = vshrl.u32 %v1732_v5, %v1208_v37  ;;  %v1216_v51 = vshll.u32 %v1732_v5, %v1207_v31  ;;  %v1217_v63 = vshrl.u32 %v1733_v7, %v1208_v37 }
 0x15a   :  { %v1155_v60 = vsub.s32 0, %v2055_v46  ;;  %v1212_v52 = vor.u32 %v1211_v45, %v1210_v40  ;;  %v1219_v2 = vshll.u32 %v1733_v7, %v1207_v31  ;;  %v1220_v4 = vshrl.u32 %v1734_v9, %v1208_v37 }
 0x15b   :  { %v1175_v19 = vsub.s32 4, %v1151_v18  ;;  %v1358_v8 = vadd.s32 536870912, %v1357_v47  ;;  %v1215_v10 = vor.u32 %v1214_v50, %v1213_v61  ;;  %v1218_v11 = vor.u32 %v1217_v63, %v1216_v51 }
 0x15c   :  { %v1526_v6 = vmin.u32 %v1155_v60, %v2055_v46  ;;  %v1221_v12 = vor.u32 %v1220_v4, %v1219_v2  ;;  %v1222_v13 = vshll.u32 %v1734_v9, %v1207_v31  ;;  %v1223_v14 = vshrl.u32 %v1735_v20, %v1208_v37 }
 0x15d   :  { %v1359_v21 = vshrl.u32 %v1358_v8, 30  ;;  %vm1226_vm1 = vcmp.lt.s32.totalorder %v2039_v17, 2  ;;  %vm1228_vm2 = vcmp.lt.s32.totalorder %v2039_v17, 4  ;;  %vm1227_vm3 = vcmp.lt.s32.totalorder %v2039_v17, 3 }
 0x15e   :  { %v1157_v15 = vclz %v1526_v6  ;;  %v1224_v22 = vor.u32 %v1223_v14, %v1222_v13  ;;  %v1233_v27 = vsel %vm1225_vm15, %v1212_v52, %v1215_v10  ;;  %v1234_v29 = vsel %vm1228_vm2, %v1221_v12, 920167782 }
 0x15f   :  { %v1176_v59 = vsel %vm1091_vm13, %v1175_v19, %v1151_v18  ;;  %v1360_v35 = vshll.u32 %v1359_v21, 30  ;;  %v1209_v48 = vshrl.u32 %v1730_v1, %v1208_v37  ;;  %v1230_v49 = vsel %vm1228_vm2, %v1218_v11, 2102212464 }
 0x160   :  { %v1527_v30 = vadd.s32 4294967294, %v1157_v15  ;;  %v1235_v53 = vsel %vm1227_vm3, %v1218_v11, %v1234_v29  ;;  %v1238_v54 = vsel %vm1228_vm2, %v1224_v22, 1326507024  ;;  %v1537_v55 = vadd.s32 4294967169, %v1405_v44 }
 0x161   :  { %v2090_v56 = vsub.s32 %v1357_v47, %v1360_v35  ;;  %v1236_v58 = vsel %vm1226_vm1, %v1233_v27, %v1235_v53  ;;  %v1237_v23 = vsel %vm1225_vm15, %v1215_v10, %v1218_v11  ;;  %v1178_v18 = vsel %vm2067_vm0, 0, %v1176_v59 }
 0x162   :  { %vm1528_vm4 = vcmp.lt.s32.totalorder %v1527_v30, 0  ;;  %v1229_v33 = vsel %vm1225_vm15, %v1209_v48, %v1212_v52  ;;  %v1239_v36 = vsel %vm1227_vm3, %v1221_v12, %v1238_v54  ;;  %v1231_v26 = vsel %vm1227_vm3, %v1215_v10, %v1230_v49 }
 0x163   :  { %v1160_v31 = vsel %vm1528_vm4, 0, %v1527_v30  ;;  %v1363_v44 = vsub.s32 0, %v2090_v56  ;;  %v1240_v40 = vsel %vm1226_vm1, %v1237_v23, %v1239_v36  ;;  %v1411_v51 = vadd.s32 1, %v1537_v55 }
 0x164   :  { %v1161_v37 = vsub.s32 32, %v1160_v31  ;;  %v1165_v42 = vsub.s32 4294967266, %v1160_v31  ;;  %v1162_v39 = vshll.u32 %v2055_v46, %v1160_v31  ;;  %v1383_v52 = vsub.s32 4, %v1359_v21 }
 0x165   :  { %v2109_v45 = vmul.u32.u64.low %v2051_v43, %v1236_v58  ;;  %v2110_v61 = vmul.u32.u64.high %v2051_v43, %v1236_v58, %v2109_v45  ;;  %v1534_v50 = vmin.u32 %v1363_v44, %v2090_v56  ;;  %v1232_v63 = vsel %vm1226_vm1, %v1229_v33, %v1231_v26 }
 0x166   :  { %v1163_v60 = vshrl.u32 %v1145_v41, %v1161_v37  ;;  %v1166_v47 = vadd.s32 127, %v1165_v42  ;;  %v2117_v2 = vmul.u32.u64.low %v2051_v43, %v1240_v40  ;;  %v2118_v46 = vmul.u32.u64.high %v2051_v43, %v1240_v40, %v2117_v2 }
 0x167   :  { %v1365_v19 = vclz %v1534_v50  ;;  %vm1412_vm5 = vcmp.gt.s32.totalorder %v1411_v51, 0  ;;  %vm2122_vm6 = vcmp.le.f32.partialorder %v1297_v32, 0.7853982  ;;  %vm1299_vm7 = vcmp.lt.s32.totalorder %v1970_v25, 0 }
 0x168   :  { %v1164_v4 = vor.u32 %v1163_v60, %v1162_v39  ;;  %v1167_v6 = vshll.u32 %v1166_v47, 23  ;;  %v1251_v8 = vadd.s32 1, %v2110_v61  ;;  %v1413_v17 = vsel %vm1412_vm5, %v1411_v51, 0 }
 0x169   :  { %v1182_v11 = vadd.s32 3, %v1178_v18  ;;  %v1535_v12 = vadd.s32 4294967294, %v1365_v19  ;;  %v1408_v13 = vand.u32 8388607, %v1401_v38  ;;  %v1384_v14 = vsel %vm1299_vm7, %v1383_v52, %v1359_v21 }
 0x16a   :  { %v1168_v10 = vor.u32 4788187, %v1167_v6  ;;  %v1248_v15 = vmul.u32 %v2051_v43, %v1232_v63  ;;  %vm1250_vm8 = vc.u32 %v2118_v46, %v2109_v45  ;;  %v1415_v32 = vand.u32 31, %v1413_v17 }
 0x16b   :  { %v1171_v27 = vcvt.s32.f32 %v1164_v4  ;;  %vm1536_vm9 = vcmp.lt.s32.totalorder %v1535_v12, 0  ;;  %v1252_v29 = vsel %vm1250_vm8, %v1251_v8, %v2110_v61  ;;  %v1353_v30 = vadd.s32 %v2035_v57, %v2043_v0 }
 0x16c   :  { %v1169_v22 = vand.u32 2147483647, %v1168_v10  ;;  %v1368_v59 = vsel %vm1536_vm9, 0, %v1535_v12  ;;  %v1253_v35 = vadd.s32 %v1252_v29, %v1248_v15  ;;  %v1416_v48 = vsub.s32 32, %v1415_v32 }
 0x16d   :  { %v2138_v53 = vand.u32 3, %v1182_v11  ;;  %v1369_v21 = vsub.s32 32, %v1368_v59  ;;  %v1373_v43 = vsub.s32 4294967266, %v1368_v59  ;;  %v1370_v54 = vshll.u32 %v2090_v56, %v1368_v59 }
 0x16e   :  { %v1172_v49 = vmul.f32 %v1171_v27, %v1169_v22  ;;  %v1386_v55 = vsel %vm2122_vm6, 0, %v1384_v14  ;;  %v1254_v58 = vadd.s32 536870912, %v1253_v35  ;;  %v1409_v23 = vor.u32 8388608, %v1408_v13 }
 0x16f   :  { %v1371_v18 = vshrl.u32 %v1353_v30, %v1369_v21  ;;  %v1374_v33 = vadd.s32 127, %v1373_v43  ;;  %v1419_v57 = vshrl.u32 %v1731_v3, %v1416_v48  ;;  %v1418_v36 = vshll.u32 %v1730_v1, %v1415_v32 }
 0x170   :  { %v1173_v31 = vxor.u32 2147483648, %v1172_v49  ;;  %v2144_v0 = vshrl.u32 %v1254_v58, 30  ;;  %v1422_v37 = vshrl.u32 %v1732_v5, %v1416_v48  ;;  %v1425_v42 = vshrl.u32 %v1733_v7, %v1416_v48 }
 0x171   :  { %v1372_v44 = vor.u32 %v1371_v18, %v1370_v54  ;;  %v1375_v26 = vshll.u32 %v1374_v33, 23  ;;  %v1424_v39 = vshll.u32 %v1732_v5, %v1415_v32  ;;  %v1414_v60 = vshrl.u32 %v1413_v17, 5 }
 0x172   :  { %v1174_v56 = vsel %vm1091_vm13, %v1173_v31, %v1172_v49  ;;  %v1256_v61 = vshll.u32 %v2144_v0, 30  ;;  %v1421_v47 = vshll.u32 %v1731_v3, %v1415_v32  ;;  %v1420_v51 = vor.u32 %v1419_v57, %v1418_v36 }
 0x173   :  { %v1177_v40 = vsel %vm2067_vm0, %v1964_v16, %v1174_v56  ;;  %v1376_v50 = vor.u32 4788187, %v1375_v26  ;;  %v1426_v52 = vor.u32 %v1425_v42, %v1424_v39  ;;  %v1427_v2 = vshll.u32 %v1733_v7, %v1415_v32 }
 0x174   :  { %1637 = vcosq.f32 %v1177_v40  ;;  %v2157_v63 = vsub.s32 %v1253_v35, %v1256_v61  ;;  %v1428_v5 = vshrl.u32 %v1734_v9, %v1416_v48  ;;  %v1379_v6 = vcvt.s32.f32 %v1372_v44 }
 0x175   :  { %1639 = vsinq.f32 %v1177_v40  ;;  %v1377_v4 = vand.u32 2147483647, %v1376_v50  ;;  %v1423_v62 = vor.u32 %v1422_v37, %v1421_v47  ;;  %v1431_v19 = vshrl.u32 %v1735_v20, %v1416_v48 }
 0x176   :  { %v1390_v8 = vadd.s32 3, %v1386_v55  ;;  %v1259_v17 = vsub.s32 0, %v2157_v63  ;;  %v1429_v3 = vor.u32 %v1428_v5, %v1427_v2  ;;  %v1430_v10 = vshll.u32 %v1734_v9, %v1415_v32 }
 0x177   :  { %v1380_v11 = vmul.f32 %v1379_v6, %v1377_v4  ;;  %vm1433_vm10 = vcmp.lt.s32.totalorder %v1414_v60, 1  ;;  %vm1436_vm11 = vcmp.lt.s32.totalorder %v1414_v60, 4  ;;  %v1449_v12 = vshll.u32 %v1409_v23, 8 }
 0x178   :  { %v1530_v13 = vmin.u32 %v1259_v17, %v2157_v63  ;;  %v1417_v7 = vshrl.u32 %v1730_v1, %v1416_v48  ;;  %v1432_v14 = vor.u32 %v1431_v19, %v1430_v10  ;;  %v1438_v15 = vsel %vm1436_vm11, %v1426_v52, 2102212464 }
 0x179   :  { %v1381_v22 = vxor.u32 2147483648, %v1380_v11  ;;  %v1441_v20 = vsel %vm1433_vm10, %v1420_v51, %v1423_v62  ;;  %v1442_v27 = vsel %vm1436_vm11, %v1429_v3, 920167782  ;;  %vm1185_vm12 = vcmp.eq.s32.totalorder %v2138_v53, 0 }
 0x17a   :  { %v1261_v29 = vclz %v1530_v13  ;;  %vm1434_vm13 = vcmp.lt.s32.totalorder %v1414_v60, 2  ;;  %vm1435_vm14 = vcmp.lt.s32.totalorder %v1414_v60, 3  ;;  %v1437_v9 = vsel %vm1433_vm10, %v1417_v7, %v1420_v51 }
 0x17b   :  { %v1382_v32 = vsel %vm1299_vm7, %v1381_v22, %v1380_v11  ;;  %v1439_v30 = vsel %vm1435_vm14, %v1423_v62, %v1438_v15  ;;  %v1443_v1 = vsel %vm1435_vm14, %v1426_v52, %v1442_v27  ;;  %v1445_v59 = vsel %vm1433_vm10, %v1423_v62, %v1426_v52 }
 0x17c   :  { %v1385_v35 = vsel %vm2122_vm6, %v1970_v25, %v1382_v32  ;;  %v1531_v48 = vadd.s32 4294967294, %v1261_v29  ;;  %v1444_v49 = vsel %vm1434_vm13, %v1441_v20, %v1443_v1  ;;  %v1446_v21 = vsel %vm1436_vm11, %v1432_v14, 1326507024 }
 0x17d   :  { %1641 = vcosq.f32 %v1385_v35  ;;  %v1447_v54 = vsel %vm1435_vm14, %v1429_v3, %v1446_v21  ;;  %v2179_v55 = vmul.u32.u64.low %v1449_v12, %v1444_v49  ;;  %v2180_v58 = vmul.u32.u64.high %v1449_v12, %v1444_v49, %v2179_v55 }
 0x17e   :  { %v1638_v43 = vpop.eup %1637  ;;  %1643 = vsinq.f32 %v1385_v35  ;;  %v1249_v31 = vadd.s32 %v2109_v45, %v2118_v46  ;;  %vm1532_vm15 = vcmp.lt.s32.totalorder %v1531_v48, 0  ;;  %v1448_v41 = vsel %vm1434_vm13, %v1445_v59, %v1447_v54 }
 0x17f   :  { %v1640_v23 = vpop.eup %1639  ;;  %v1264_v18 = vsel %vm1532_vm15, 0, %v1531_v48  ;;  %v2186_v33 = vmul.u32.u64.low %v1449_v12, %v1448_v41  ;;  %v2187_v57 = vmul.u32.u64.high %v1449_v12, %v1448_v41, %v2186_v33  ;;  %v1440_v56 = vsel %vm1434_vm13, %v1437_v9, %v1439_v30 }
 0x180   :  { %v1186_v36 = vxor.u32 2147483648, %v1640_v23  ;;  %v1265_v37 = vsub.s32 32, %v1264_v18  ;;  %v1269_v42 = vsub.s32 4294967266, %v1264_v18  ;;  %v1189_v44 = vxor.u32 2147483648, %v1638_v43 }
 0x181   :  { %v1459_v26 = vadd.s32 1, %v2180_v58  ;;  %vm1184_vm0 = vcmp.lt.s32.totalorder %v2138_v53, 2  ;;  %vm1188_vm1 = vcmp.eq.s32.totalorder %v2138_v53, 2  ;;  %v1266_v46 = vshll.u32 %v2157_v63, %v1264_v18 }
 0x182   :  { %v1187_v45 = vsel %vm1185_vm12, %v1638_v43, %v1186_v36  ;;  %v1267_v39 = vshrl.u32 %v1249_v31, %v1265_v37  ;;  %v1270_v40 = vadd.s32 127, %v1269_v42  ;;  %v1190_v61 = vsel %vm1188_vm1, %v1189_v44, %v1640_v23 }
 0x183   :  { %vm1181_vm2 = vweird.f32 %v1964_v16  ;;  %v1456_v47 = vmul.u32 %v1449_v12, %v1440_v56  ;;  %vm1458_vm3 = vc.u32 %v2187_v57, %v2179_v55  ;;  %v1191_v60 = vsel %vm1184_vm0, %v1187_v45, %v1190_v61 }
 0x184   :  { %v1268_v50 = vor.u32 %v1267_v39, %v1266_v46  ;;  %v1271_v51 = vshll.u32 %v1270_v40, 23  ;;  %v1460_v52 = vsel %vm1458_vm3, %v1459_v26, %v2180_v58  ;;  %v1192_v2 = vsel %vm1181_vm2, nan, %v1191_v60 }
 0x185   :  { %v1391_v5 = vand.u32 3, %v1390_v8  ;;  %v1461_v4 = vadd.s32 %v1460_v52, %v1456_v47  ;;  %1505 = vst [vmem:[#allocation7] sm:$0xff] %v1192_v2  ;;  %v1279_v12 = vsub.s32 4, %v2144_v0  ;;  %vm1389_vm7 = vweird.f32 %v1970_v25 }
 0x186   :  { %v1272_v53 = vor.u32 4788187, %v1271_v51  ;;  %v1275_v17 = vcvt.s32.f32 %v1268_v50  ;;  %vm1195_vm8 = vcmp.lt.s32.totalorder %v1968_v24, 0  ;;  %vm1194_vm9 = vcmp.le.f32.partialorder %v1193_v28, 0.7853982 }
 0x187   :  { %v1642_v63 = vpop.eup %1641  ;;  %v1462_v6 = vadd.s32 536870912, %v1461_v4  ;;  %vm1396_vm4 = vcmp.eq.s32.totalorder %v1391_v5, 2  ;;  %vm1393_vm5 = vcmp.eq.s32.totalorder %v1391_v5, 0  ;;  %vm1392_vm6 = vcmp.lt.s32.totalorder %v1391_v5, 2 }
 0x188   :  { %v1644_v62 = vpop.eup %1643  ;;  %v1273_v19 = vand.u32 2147483647, %v1272_v53  ;;  %v1397_v16 = vxor.u32 2147483648, %v1642_v63  ;;  %v1280_v29 = vsel %vm1195_vm8, %v1279_v12, %v2144_v0  ;;  %v1457_v28 = vadd.s32 %v2179_v55, %v2187_v57 }
 0x189   :  { %v2200_v3 = vshrl.u32 %v1462_v6, 30  ;;  %v1394_v10 = vxor.u32 2147483648, %v1644_v62  ;;  %v1282_v30 = vsel %vm1194_vm9, 0, %v1280_v29  ;;  %vm1285_vm14 = vweird.f32 %v1968_v24 }
 0x18a   :  { %v1276_v11 = vmul.f32 %v1275_v17, %v1273_v19  ;;  %v1398_v13 = vsel %vm1396_vm4, %v1397_v16, %v1644_v62  ;;  %v1286_v59 = vadd.s32 3, %v1282_v30  ;;  %vm1403_vm15 = vcmp.lt.s32.totalorder %v1978_v34, 0 }
 0x18b   :  { %v1464_v8 = vshll.u32 %v2200_v3, 30  ;;  %v1395_v7 = vsel %vm1393_vm5, %v1642_v63, %v1394_v10  ;;  %v1487_v46 = vsub.s32 4, %v2200_v3  ;;  %vm1402_vm0 = vcmp.le.f32.partialorder %v1401_v38, 0.7853982 }
 0x18c   :  { %v1277_v14 = vxor.u32 2147483648, %v1276_v11  ;;  %v1399_v15 = vsel %vm1392_vm6, %v1395_v7, %v1398_v13  ;;  %v1287_v48 = vand.u32 3, %v1286_v59  ;;  %vm1493_vm4 = vweird.f32 %v1978_v34 }
 0x18d   :  { %v1465_v22 = vsub.s32 %v1461_v4, %v1464_v8  ;;  %v1400_v20 = vsel %vm1389_vm7, nan, %v1399_v15  ;;  %v1488_v61 = vsel %vm1403_vm15, %v1487_v46, %v2200_v3 }
 0x18e   :  { %v1278_v27 = vsel %vm1195_vm8, %v1277_v14, %v1276_v11  ;;  %1507 = vst [vmem:[#allocation7 + $0x10] sm:$0xff] %v1400_v20  ;;  %vm1292_vm11 = vcmp.eq.s32.totalorder %v1287_v48, 2  ;;  %vm1289_vm12 = vcmp.eq.s32.totalorder %v1287_v48, 0  ;;  %vm1288_vm13 = vcmp.lt.s32.totalorder %v1287_v48, 2 }
 0x18f   :  { %v1281_v9 = vsel %vm1194_vm9, %v1968_v24, %v1278_v27  ;;  %v1467_v32 = vsub.s32 0, %v1465_v22  ;;  %v1490_v47 = vsel %vm1402_vm0, 0, %v1488_v61 }
 0x190   :  { %1645 = vcosq.f32 %v1281_v9  ;;  %v1494_v60 = vadd.s32 3, %v1490_v47 }
 0x191   :  { %1647 = vsinq.f32 %v1281_v9  ;;  %v1538_v25 = vmin.u32 %v1467_v32, %v1465_v22 }
 0x192   :  { %v1495_v50 = vand.u32 3, %v1494_v60 }
 0x193   :  { %v1469_v1 = vclz %v1538_v25 }
 0x194   :  { %vm1500_vm1 = vcmp.eq.s32.totalorder %v1495_v50, 2  ;;  %vm1497_vm2 = vcmp.eq.s32.totalorder %v1495_v50, 0  ;;  %vm1496_vm3 = vcmp.lt.s32.totalorder %v1495_v50, 2 }
 0x195   :  { %v1539_v35 = vadd.s32 4294967294, %v1469_v1 }
 0x197   :  { %vm1540_vm10 = vcmp.lt.s32.totalorder %v1539_v35, 0 }
 0x198   :  { %v1472_v49 = vsel %vm1540_vm10, 0, %v1539_v35 }
 0x199   :  { %v1473_v21 = vsub.s32 32, %v1472_v49  ;;  %v1477_v43 = vsub.s32 4294967266, %v1472_v49  ;;  %v1474_v23 = vshll.u32 %v1465_v22, %v1472_v49 }
 0x19a   :  { %v1646_v0 = vpop.eup %1645 }
 0x19b   :  { %v1648_v54 = vpop.eup %1647  ;;  %v1293_v58 = vxor.u32 2147483648, %v1646_v0  ;;  %v1475_v31 = vshrl.u32 %v1457_v28, %v1473_v21  ;;  %v1478_v41 = vadd.s32 127, %v1477_v43 }
 0x19c   :  { %v1290_v18 = vxor.u32 2147483648, %v1648_v54 }
 0x19d   :  { %v1294_v33 = vsel %vm1292_vm11, %v1293_v58, %v1648_v54  ;;  %v1476_v36 = vor.u32 %v1475_v31, %v1474_v23  ;;  %v1479_v37 = vshll.u32 %v1478_v41, 23 }
 0x19e   :  { %v1291_v42 = vsel %vm1289_vm12, %v1646_v0, %v1290_v18 }
 0x19f   :  { %v1295_v56 = vsel %vm1288_vm13, %v1291_v42, %v1294_v33  ;;  %v1480_v55 = vor.u32 4788187, %v1479_v37  ;;  %v1483_v26 = vcvt.s32.f32 %v1476_v36 }
 0x1a0   :  { %v1296_v57 = vsel %vm1285_vm14, nan, %v1295_v56 }
 0x1a1   :  { %1506 = vst [vmem:[#allocation7 + $0x8] sm:$0xff] %v1296_v57  ;;  %v1481_v44 = vand.u32 2147483647, %v1480_v55 }
 0x1a3   :  { %v1484_v45 = vmul.f32 %v1483_v26, %v1481_v44 }
 0x1a5   :  { %v1485_v39 = vxor.u32 2147483648, %v1484_v45 }
 0x1a7   :  { %v1486_v40 = vsel %vm1403_vm15, %v1485_v39, %v1484_v45 }
 0x1a8   :  { %v1489_v24 = vsel %vm1402_vm0, %v1978_v34, %v1486_v40 }
 0x1a9   :  { %1649 = vcosq.f32 %v1489_v24 }
 0x1aa   :  { %1651 = vsinq.f32 %v1489_v24 }
 0x1b3   :  { %v1650_v51 = vpop.eup %1649 }
 0x1b4   :  { %v1652_v52 = vpop.eup %1651  ;;  %v1501_v2 = vxor.u32 2147483648, %v1650_v51 }
 0x1b5   :  { %v1498_v5 = vxor.u32 2147483648, %v1652_v52 }
 0x1b6   :  { %v1502_v4 = vsel %vm1500_vm1, %v1501_v2, %v1652_v52 }
 0x1b7   :  { %v1499_v38 = vsel %vm1497_vm2, %v1650_v51, %v1498_v5 }
 0x1b8   :  { %v1503_v53 = vsel %vm1496_vm3, %v1499_v38, %v1502_v4 }
 0x1b9   :  { %v1504_v63 = vsel %vm1493_vm4, nan, %v1503_v53 }
 0x1ba   :  { %1508 = vst [vmem:[#allocation7 + $0x18] sm:$0xff] %v1504_v63 }
 0x1bb   :  { %1708 = shalt.err (!%p1705_p6)
}
 0x1bc   :  { %s1709_s10 = scalar_lea.hbm %s2234_s2, 512 }
 0x1bd   :  { %p1710_p7 = scmp.ne.s32.totalorder %s2234_s2, %s1709_s10  ;;  %p1713_p8 = scmp.lt.u32.totalorder %s1709_s10, %s2234_s2 }
 0x1bf   :  { %p1715_p9 = pnand %p1713_p8, %p1710_p7 }
 0x1c1   :  { %1718 = shalt.err (!%p1715_p9)
}
 0x1c2   :  { %1518 = dma.vmem_to_hbm [thread:$0]  %s1516_s6, 512, %s2234_s2, [#allocation4]  }
 0x1c3   :  { %1723 = dma.done.wait [#allocation4], 512  }
 0x1c4   :  { %1724 = vsyncadd [#allocation4], 4294966784 }
 0x1c5   :  { %1522 = vsyncpa [#allocation3], 1 }
 0x1c6   :  { %1523 = vsyncpa [#allocation6], 1 }
 0x1c7   :  { %1524 = vsyncpa [#allocation4], 1 }

</bundles_post_ra>
